<compile_context>
chip_gen: v7x
topology: tpu7x:2x2x1
jax: 0.10.0
libtpu: 0.0.40
codegen_flags: <defaults>
</compile_context>

<pallas_src>
import jax
import jax.numpy as jnp
from jax.experimental import pallas as pl
from jax.experimental.pallas import tpu as pltpu


# Pre-activation value fed to the carrier row of every hidden layer: tanh(30) == 1.0
# in float32 (error < 1e-26), so the "ones" row survives the activation and keeps
# acting as the bias multiplier for the next augmented matmul.
_CARRIER_PREACT = 30.0


def _make_mlp_kernel(num_layers, tanh_dtype=jnp.float32):
    """Kernel body: pure (augmented) matmul -> tanh chain.

    Ref layout: (x_ref, w_aug_0, ..., w_aug_{L-1}, o_ref)
      x_ref    : (in_dim + 1, tile_n)   -- batch on lanes, last row == 1 (bias carrier)
      w_aug_i  : hidden: (out_i + 1, in_i + 1)   [[W_i, b_i], [0, CARRIER]]
                 last  : (out_L,     in_L + 1)   [W_L, b_L]
      o_ref    : (out_dim, tile_n)      -- lane-dense output
    """

    def kernel(*refs):
        x_ref = refs[0]
        w_refs = refs[1:1 + num_layers]
        o_ref = refs[-1]

        a = x_ref[...]                                    # f32 (wrapper mirrors x.float())
        for i in range(num_layers):
            # nn.Linear (+ bias) == one augmented MXU matmul with batch on lanes.
            z = jnp.dot(w_refs[i][...], a, preferred_element_type=jnp.float32)
            if i < num_layers - 1:
                # tanh_dtype=bf16 is an optional v6e/v7x-only lever (EUP bf16 ~2x);
                # default stays f32 for PINN accuracy and v5e compatibility.
                a = jnp.tanh(z.astype(tanh_dtype))
            else:
                a = z                                     # no activation on last layer
        o_ref[...] = a.astype(o_ref.dtype)

    return kernel


def _augment_params(weights, biases):
    """Fold biases into the weights (augmented affine form)."""
    num_layers = len(weights)
    w_aug = []
    for i, (w, b) in enumerate(zip(weights, biases)):
        w = w.astype(jnp.float32)
        b = b.reshape(-1, 1).astype(jnp.float32)
        wb = jnp.concatenate([w, b], axis=1)              # (out_i, in_i + 1)
        if i < num_layers - 1:
            # Carrier row: pre-activation CARRIER -> tanh -> 1.0, re-creating the
            # "ones" row of the augmented activation for the next layer.
            carrier = jnp.zeros((1, wb.shape[1]), jnp.float32).at[0, -1].set(_CARRIER_PREACT)
            wb = jnp.concatenate([wb, carrier], axis=0)   # (out_i + 1, in_i + 1)
        w_aug.append(wb)
    return w_aug


def _pick_tile(batch, max_tile=8192, min_tile=256):
    """Lane-side batch tile: as large as possible, but keep >= 2 grid steps when the
    batch allows it (v7x megacore), 256-aligned (v6e/v7x MXU; also 128-aligned for v5e)."""
    def round_up(v, m):
        return ((v + m - 1) // m) * m

    if batch <= min_tile:
        return min_tile
    half = round_up(pl.cdiv(batch, 2), min_tile)          # target ~2 parallel steps
    return min(max_tile, half)


def nn2_forward(x, weights, biases, *, max_tile=8192, tanh_dtype=jnp.float32):
    """Forward pass of NN2 via a single pallas_call.

    Args:
      x:        (batch, in_dim) array (any float dtype; cast to f32 like `x.float()`).
      weights:  list of (out_i, in_i) arrays (torch orientation).
      biases:   list of (out_i,) arrays.
      max_tile: cap on the lane-side batch tile (VMEM stays <~3 MiB even at 8192).
      tanh_dtype: jnp.float32 (default) or jnp.bfloat16 (optional v6e/v7x EUP lever).

    Returns:
      (batch, out_dim) float32 array.
    """
    batch, in_dim = x.shape
    num_layers = len(weights)
    out_dim = weights[-1].shape[0]

    tile_n = _pick_tile(batch, max_tile)
    n_blocks = pl.cdiv(batch, tile_n)                     # ragged last block handled by Pallas

    w_aug = _augment_params(weights, biases)

    # Batch on the lane axis + bias-carrier ones row appended.  Single cheap XLA pass
    # over (batch, in_dim+1) floats; no jnp.pad over the batch anymore.
    xt = jnp.concatenate(
        [x.astype(jnp.float32), jnp.ones((batch, 1), jnp.float32)], axis=1).T  # (in_dim+1, batch)

    in_specs = [pl.BlockSpec((in_dim + 1, tile_n), lambda i: (0, i))]
    for w in w_aug:
        # Full (tiny) weight blocks with a constant index map: DMA'd once, then
        # VMEM-resident across all grid steps.
        in_specs.append(pl.BlockSpec(w.shape, lambda i: (0, 0)))

    out_specs = pl.BlockSpec((out_dim, tile_n), lambda i: (0, i))

    fn = pl.pallas_call(
        _make_mlp_kernel(num_layers, tanh_dtype=tanh_dtype),
        out_shape=jax.ShapeDtypeStruct((out_dim, batch), jnp.float32),
        grid=(n_blocks,),
        in_specs=in_specs,
        out_specs=out_specs,
        compiler_params=pltpu.CompilerParams(
            dimension_semantics=("parallel",)),            # batch tiles split across TCs on v7x
    )

    out_t = fn(xt, *w_aug)                                # (out_dim, batch)
    return out_t.T                                        # (batch, out_dim)


def init_nn2_params(key, layers):
    """xavier_normal_ weights and zero biases, as in NN2.__init__.

    Weights kept in torch (out, in) orientation; biases are (out,).
    """
    weights, biases = [], []
    for i in range(len(layers) - 1):
        fan_in, fan_out = layers[i], layers[i + 1]
        key, sub = jax.random.split(key)
        std = (2.0 / (fan_in + fan_out)) ** 0.5
        w = std * jax.random.normal(sub, (fan_out, fan_in), dtype=jnp.float32)
        b = jnp.zeros((fan_out,), dtype=jnp.float32)
        weights.append(w)
        biases.append(b)
    return weights, biases


def nn2_forward_ref(x, weights, biases):
    """Pure-JAX reference of the same forward pass (for correctness check)."""
    a = x.astype(jnp.float32)
    for i, (w, b) in enumerate(zip(weights, biases)):
        z = a @ w.T + b
        a = jnp.tanh(z) if i < len(weights) - 1 else z
    return a


# TODO(synk): the loss terms (lossR / lossRH / lossIC / lossBC) need autograd through
# the forward and composition with other networks; they are not part of this kernel.

if __name__ == "__main__":
    # NN2 is a PINN taking (x, t) pairs -> scalar u, e.g. layers = [2, 32, 32, 1].
    layers = [2, 32, 32, 1]
    batch = 1000          # deliberately NOT a multiple of the tile: exercises the
                          # ragged last block; tile -> 512, grid -> 2 parallel steps.

    key = jax.random.PRNGKey(0)
    key, kx = jax.random.split(key)
    x = jax.random.uniform(kx, (batch, layers[0]), dtype=jnp.float32)

    weights, biases = init_nn2_params(jax.random.PRNGKey(0), layers)
    # The module initializes biases to zero, but training makes them nonzero; use
    # random biases here so the bias-folding (augmented-affine) path is actually tested.
    new_biases = []
    for b in biases:
        key, kb = jax.random.split(key)
        new_biases.append(0.5 * jax.random.normal(kb, b.shape, dtype=jnp.float32))
    biases = new_biases

    out = nn2_forward(x, weights, biases)
    out = jax.block_until_ready(out)

    ref = nn2_forward_ref(x, weights, biases)
    assert out.shape == (batch, layers[-1])
    assert jnp.allclose(out, ref, atol=1e-5, rtol=1e-5), \
        f"max abs err = {jnp.max(jnp.abs(out - ref))}"

    print("KERNEL_OK")
</pallas_src>

<mosaic_0001>
module attributes {stable_mosaic.version = 11 : i64} {
  func.func @kernel(%arg0: i32, %arg1: memref<3x512xf32, #tpu.memory_space<vmem>>, %arg2: memref<33x3xf32, #tpu.memory_space<vmem>>, %arg3: memref<33x33xf32, #tpu.memory_space<vmem>>, %arg4: memref<1x33xf32, #tpu.memory_space<vmem>>, %arg5: memref<1x512xf32, #tpu.memory_space<vmem>>) attributes {dimension_semantics = [#tpu.dimension_semantics<parallel>], iteration_bounds = array<i64: 2>, scalar_prefetch = 0 : i64, scratch_operands = 0 : i64, tpu.core_type = #tpu.core_type<tc>, window_params = [{transform_indices = @transform_0, window_bounds = array<i64: 3, 512>}, {pipeline_mode = #tpu.pipeline_mode<synchronous>, transform_indices = @transform_1, window_bounds = array<i64: 33, 3>}, {pipeline_mode = #tpu.pipeline_mode<synchronous>, transform_indices = @transform_2, window_bounds = array<i64: 33, 33>}, {pipeline_mode = #tpu.pipeline_mode<synchronous>, transform_indices = @transform_3, window_bounds = array<i64: 1, 33>}, {transform_indices = @transform_4, window_bounds = array<i64: 1, 512>}]} {
    %c0 = arith.constant 0 : index
    %c0_0 = arith.constant 0 : index
    %0 = vector.load %arg1[%c0, %c0_0] : memref<3x512xf32, #tpu.memory_space<vmem>>, vector<3x512xf32>
    %c0_1 = arith.constant 0 : index
    %c0_2 = arith.constant 0 : index
    %1 = vector.load %arg2[%c0_1, %c0_2] : memref<33x3xf32, #tpu.memory_space<vmem>>, vector<33x3xf32>
    %cst = arith.constant dense<0.000000e+00> : vector<33x512xf32>
    %2 = tpu.matmul %1, %0, %cst {dimension_numbers = #tpu.dot_dimension_numbers<[1], [0], [0], [1], [0, 0, 1, 1], [], []>} : vector<33x3xf32>, vector<3x512xf32>, vector<33x512xf32> -> vector<33x512xf32>
    %3 = math.tanh %2 : vector<33x512xf32>
    %c0_3 = arith.constant 0 : index
    %c0_4 = arith.constant 0 : index
    %4 = vector.load %arg3[%c0_3, %c0_4] : memref<33x33xf32, #tpu.memory_space<vmem>>, vector<33x33xf32>
    %cst_5 = arith.constant dense<0.000000e+00> : vector<33x512xf32>
    %5 = tpu.matmul %4, %3, %cst_5 {dimension_numbers = #tpu.dot_dimension_numbers<[1], [0], [0], [1], [0, 0, 1, 1], [], []>} : vector<33x33xf32>, vector<33x512xf32>, vector<33x512xf32> -> vector<33x512xf32>
    %6 = math.tanh %5 : vector<33x512xf32>
    %c0_6 = arith.constant 0 : index
    %c0_7 = arith.constant 0 : index
    %7 = vector.load %arg4[%c0_6, %c0_7] : memref<1x33xf32, #tpu.memory_space<vmem>>, vector<1x33xf32>
    %cst_8 = arith.constant dense<0.000000e+00> : vector<1x512xf32>
    %8 = tpu.matmul %7, %6, %cst_8 {dimension_numbers = #tpu.dot_dimension_numbers<[1], [0], [0], [1], [0, 0, 1, 1], [], []>} : vector<1x33xf32>, vector<33x512xf32>, vector<1x512xf32> -> vector<1x512xf32>
    %c0_9 = arith.constant 0 : index
    %c0_10 = arith.constant 0 : index
    %9 = vector.load %arg5[%c0_9, %c0_10] : memref<1x512xf32, #tpu.memory_space<vmem>>, vector<1x512xf32>
    tpu.vector_store %arg5[%c0_9, %c0_10], %8 {strides = array<i32>} : memref<1x512xf32, #tpu.memory_space<vmem>>, vector<1x512xf32>,
    return
  }
  func.func @transform_0(%arg0: i32) -> (i32, i32) {
    %c0_i32 = arith.constant 0 : i32
    %c0_i32_0 = arith.constant 0 : i32
    return %c0_i32, %arg0 : i32, i32
  }
  func.func @transform_1(%arg0: i32) -> (i32, i32) {
    %c0_i32 = arith.constant 0 : i32
    %c0_i32_0 = arith.constant 0 : i32
    %c0_i32_1 = arith.constant 0 : i32
    return %c0_i32, %c0_i32_0 : i32, i32
  }
  func.func @transform_2(%arg0: i32) -> (i32, i32) {
    %c0_i32 = arith.constant 0 : i32
    %c0_i32_0 = arith.constant 0 : i32
    %c0_i32_1 = arith.constant 0 : i32
    return %c0_i32, %c0_i32_0 : i32, i32
  }
  func.func @transform_3(%arg0: i32) -> (i32, i32) {
    %c0_i32 = arith.constant 0 : i32
    %c0_i32_0 = arith.constant 0 : i32
    %c0_i32_1 = arith.constant 0 : i32
    return %c0_i32, %c0_i32_0 : i32, i32
  }
  func.func @transform_4(%arg0: i32) -> (i32, i32) {
    %c0_i32 = arith.constant 0 : i32
    %c0_i32_0 = arith.constant 0 : i32
    return %c0_i32, %arg0 : i32, i32
  }
}

</mosaic_0001>

<bundles_post_ra>
// kernel: tpu_custom_call.1
= control target key start
LH: loop header
LB: loop body
LE: loop exit
PB: predicated region body
PF: predicated region fallthrough
CT: control target
= control target key end

     0   :  { %9 = vsyncpa [#allocation3], 0  ;;  %s1569_s0 = inlined_call_operand.hbm [shape: f32[3,1000], index: 0, kind: input, shape index: {}]   ;;  %s1570_s1 = inlined_call_operand.vmem [shape: f32[33,3], index: 1, kind: input, shape index: {}]   ;;  %s1571_s2 = inlined_call_operand.vmem [shape: f32[33,33], index: 2, kind: input, shape index: {}]   ;;  %s1572_s3 = inlined_call_operand.vmem [shape: f32[1,33], index: 3, kind: input, shape index: {}]   ;;  %s1573_s4 = inlined_call_operand.hbm [shape: f32[1,1000], index: 4, kind: output, shape index: {}]  }
   0x1   :  { %11 = vsyncpa [#allocation3 + $0x1], 0 }
   0x2   :  { %12 = vsyncpa [#allocation4], 0 }
   0x3   :  { %14 = vsyncpa [#allocation4 + $0x1], 0  ;;  %s1322_s15 = smov 0   ;;  %s1324_s16 = smov 0  }
   0x4   :  { %s1326_s17 = smov 0   ;;  %s1328_s18 = smov 0  }
   0x5 LB: > { %s1343_s19 = sadd.s32 4294967295, %s1291_s18   ;;  %s983_s20 = sadd.s32 4294967294, %s1291_s18   ;;  %s1291_s18 = sphi %s1328_s18, %s1588_s18   ;;  %s1287_s17 = sphi %s1326_s17, %s1587_s17   ;;  %s1283_s16 = sphi %s1324_s16, %s1586_s16   ;;  %s1279_s15 = sphi %s1322_s15, %s1585_s15  }
   0x6   : > { %s1347_s21 = sadd.s32 1, %s1291_s18   ;;  %s27_s22 = sadd.s32 1, %s1287_s17 }
   0x7   : > { %s24_s23 = ssub.s32 %s1291_s18, %s1347_s21  ;;  %p34_p0 = scmp.ne.s32.totalorder %s1287_s17, %s1283_s16 }
   0x8   : > { %p25_p1 = scmp.eq.s32.totalorder %s24_s23, 0  ;;  %p35_p2 = scmp.eq.s32.totalorder %s1291_s18, 0 }
   0x9   : > { %p40_p3 = scmp.ne.s32.totalorder %s1283_s16, %s1279_s15  ;;  %p41_p4 = scmp.eq.s32.totalorder %s1343_s19, 0 }
   0xa   : > { %s1359_s24 = scalar_select %p25_p1, %s1287_s17, %s27_s22  }
   0xb   : > { %p1361_p5 = por %p35_p2, %p34_p0  ;;  %p1365_p6 = por %p41_p4, %p40_p3 }
   0xc   : > { %p127_p7 = scmp.eq.s32.totalorder %s1343_s19, 1  ;;  %p133_p8 = scmp.eq.s32.totalorder %s983_s20, 1 }
   0xd   : > { %p1077_p10 = scmp.lt.s32.totalorder %s1291_s18, 2  ;;  %s162_s29 = sand.u32 1, %s1287_s17  }
   0xe   : > { %p1372_p11 = por %p127_p7, %p34_p0  ;;  %p1376_p12 = por %p133_p8, %p40_p3 }
   0xf   : > { %s1031_s30 = sshll.u32 %s1291_s18, 8  ;;  %s986_s5 = sshll.u32 %s162_s29, 4 }
  0x10   : > { %s1577_s27 = scalar_select %p1372_p11, 1, 0 }
  0x11   : > { %s1578_s28 = scalar_select %p1376_p12, 1, 0 }
  0x12   : > { %s1385_s8 = scalar_lea.hbm %s1569_s0, %s1031_s30  ;;  %s166_s9 = scalar_lea.vmem [#allocation2], %s986_s5 }
  0x13   : > { %s174_s10 = sshll.u32 %s166_s9, 4  ;;  %p1389_p13 = pnand %p1077_p10, %p1361_p5  ;;  %s1393_s10 = int_to_ptr.vmem [resolvable:$true] %s174_s10 }
  0x14   : > { %s163_s12 = scalar_lea.sflag [#allocation3], %s162_s29  ;;  %s1195_s13 = scalar_lea.hbm %s1385_s8, 256 }
  0x15   : > { %p1196_p2 = scmp.ne.s32.totalorder %s1385_s8, %s1195_s13  ;;  %p1197_p3 = pneg %p1389_p13 }
  0x16   : > { %s1200_s22 = scalar_lea.hbm %s1569_s0, 512  ;;  %p1201_p5 = scmp.lt.u32.totalorder %s1385_s8, %s1569_s0 }
  0x17   : > { %p1198_p4 = pnand %p1197_p3, %p1196_p2  ;;  %p1202_p8 = scmp.lt.u32.totalorder %s1200_s22, %s1195_s13 }
  0x18   : > { %p1204_p9 = scmp.lt.u32.totalorder %s1195_s13, %s1385_s8 }
  0x19   : > { %p1199_p7 = pneg %p1198_p4  ;;  %p1203_p10 = por %p1202_p8, %p1201_p5 }
  0x1b   : > { %p1205_p0 = por %p1204_p9, %p1203_p10 }
  0x1d   : > { %p1206_p1 = pnand %p1205_p0, %p1199_p7 }
  0x1f   : > { %1209 = shalt.err (!%p1206_p1)
}
  0x20   : > { %s1210_s29 = scalar_lea.vmem %s1393_s10, 256  ;;  %s1293_s30 = smov [#allocation2]  }
  0x21   : > { %p1211_p2 = scmp.ne.s32.totalorder %s1393_s10, %s1210_s29  ;;  %s1215_s5 = sshll.u32 %s1293_s30, 4  ;;  %s1216_s5 = int_to_ptr.vmem [resolvable:$false] %s1215_s5 }
  0x22   : > { %s1217_s6 = scalar_lea.vmem %s1216_s5, 512  ;;  %p1218_p11 = scmp.lt.s32.totalorder %s1393_s10, %s1216_s5 }
  0x23   : > { %p1213_p4 = pnand %p1211_p2, %p1197_p3  ;;  %p1219_p5 = scmp.lt.s32.totalorder %s1217_s6, %s1210_s29 }
  0x25   : > { %p1214_p12 = pneg %p1213_p4  ;;  %p1220_p8 = por %p1219_p5, %p1218_p11 }
  0x27   : > { %p1221_p9 = pnand %p1220_p8, %p1214_p12 }
  0x29   : > { %1224 = shalt.err (!%p1221_p9)
}
  0x2a   : > { %1072 = dma.hbm_to_vmem [thread:$0]  (!%p1389_p13), %s1385_s8, 256, %s1393_s10, %s163_s12  }
  0x2b   : > { %p1580_p0 = scmp.lt.s32.totalorder %s1291_s18, 3  ;;  %p1581_p1 = scmp.ge.s32.totalorder %s1291_s18, 1 }
  0x2d   : > { %p180_p3 = pnand %p1581_p1, %p1580_p0 }
  0x2e   : > { %s1427_s7 = sand.u32 (!%p180_p3), 1, %s1283_s16  }
  0x2f   : > { %183 = sbr.rel (%p180_p3) target bundleno = 787 (0x313), region = 36  ;;  %s990_s9 = sshll.u32 (!%p180_p3), %s1427_s7, 4 }
  0x30   : > { %s186_s13 = scalar_lea.sflag (!%p180_p3), [#allocation3], %s1427_s7  ;;  %s189_s14 = scalar_lea.vmem (!%p180_p3), [#allocation2], %s990_s9 }
  0x36   : > { %1270 = dma.done.wait (%p1365_p6), %s186_s13, 256  }
  0x37   : > { %1272 = vsyncadd (%p1365_p6), %s186_s13, 4294967040  ;;  %v1294_v0 = vmov 0.0   ;;  %v216_v1 = vld [vmem:[%s189_s14] sm:$0x77]  ;;  %vm243_vm0 = vcmask 1042432   ;;  %vm227_vm1 = vcmask 23552  }
  0x38   : > { %316 = vmatprep.mubr.f32.mxu0 %v1294_v0  ;;  %411 = vmatprep.mubr.f32.mxu1 %v1294_v0  ;;  %v217_v2 = vld [vmem:[%s189_s14 + $0x8] sm:$0x77]  ;;  %v225_v3 = vcombine.high %v216_v1, %v216_v1  ;;  %v218_v5 = vld [vmem:[%s1570_s1] sm:$0xff]  ;;  %v220_v7 = vld [vmem:[%s1570_s1 + $0x10] sm:$0xff]  ;;  %vm483_vm2 = vcmask 1040384   ;;  %vm467_vm3 = vcmask 269312  }
  0x39   : > { %v226_v4 = vcombine.high %v217_v2, %v217_v2  ;;  %v219_v6 = vld [vmem:[%s1570_s1 + $0x8] sm:$0xff]  ;;  %v221_v8 = vld [vmem:[%s1570_s1 + $0x18] sm:$0xff]  ;;  %v222_v9 = vld [vmem:[%s1570_s1 + $0x20] sm:$0x1]  ;;  %s991_s22 = sshll.u32 %s1427_s7, 2  ;;  %s1032_s23 = sshll.u32 %s1343_s19, 6 }
  0x3a   : > { %992 = vmatprep.subr.msk.mxu0 %vm243_vm0, %v225_v3  ;;  %v462_v56 = vld [vmem:[%s1571_s2] sm:$0xff]  ;;  %v463_v59 = vld [vmem:[%s1571_s2 + $0x8] sm:$0xff]  ;;  %v464_v60 = vld [vmem:[%s1571_s2 + $0x10] sm:$0xff]  ;;  %s213_s25 = scalar_lea.vmem [#allocation5], %s991_s22  ;;  %s1525_s6 = scalar_lea.hbm %s1573_s4, %s1032_s23 }
  0x3b   : > { %999 = vmatprep.subr.msk.mxu1 %vm243_vm0, %v226_v4  ;;  %993 = vmatpush1.msk.msra.mxu0 %vm243_vm0, %v216_v1  ;;  %v465_v61 = vld [vmem:[%s1571_s2 + $0x18] sm:$0xff]  ;;  %v466_v62 = vld [vmem:[%s1571_s2 + $0x20] sm:$0x1]  ;;  %s913_s29 = sshll.u32 %s213_s25, 4  ;;  %s899_s9 = scalar_lea.sflag [#allocation4], %s1427_s7  ;;  %s1527_s29 = int_to_ptr.vmem [resolvable:$true] %s913_s29 }
  0x3c   : > { %1000 = vmatpush1.msk.msra.mxu1 %vm243_vm0, %v217_v2  ;;  %994 = vmatmul.mubr.msk.f32.vlgmr.msra.gmra.mrb[0].mxu0 %vm227_vm1, %v218_v5  ;;  %s1225_s13 = scalar_lea.vmem %s1527_s29, 64  ;;  %p1582_p11 = scmp.ne.s32.totalorder %s1577_s27, 0 }
  0x3d   : > { %1001 = vmatmul.mubr.msk.f32.vlgmr.msra.gmra.mrb[0].mxu1 %vm227_vm1, %v218_v5  ;;  %322 = vmatprep.mubr.f32.mxu0 %v1294_v0  ;;  %p1226_p6 = scmp.ne.s32.totalorder %s1527_s29, %s1225_s13  ;;  %s1296_s19 = smov [#allocation5]  }
  0x3e   : > { %417 = vmatprep.mubr.f32.mxu1 %v1294_v0  ;;  %s1229_s14 = sshll.u32 %s1296_s19, 4  ;;  %s1230_s14 = int_to_ptr.vmem [resolvable:$false] %s1229_s14 }
  0x3f   : > { %p1227_p12 = pnand %p1226_p6, %p1582_p11  ;;  %s1231_s8 = scalar_lea.vmem %s1230_s14, 128 }
  0x40   : > { %995 = vmatmul.mubr.msk.f32.gmra.mrb[2].mxu0 %vm227_vm1, %v219_v6  ;;  %p1232_p7 = scmp.lt.s32.totalorder %s1527_s29, %s1230_s14  ;;  %p1233_p10 = scmp.lt.s32.totalorder %s1231_s8, %s1225_s13 }
  0x41   : > { %1002 = vmatmul.mubr.msk.f32.gmra.mrb[2].mxu1 %vm227_vm1, %v219_v6  ;;  %328 = vmatprep.mubr.f32.mxu0 %v1294_v0  ;;  %p1228_p13 = pneg %p1227_p12 }
  0x42   : > { %423 = vmatprep.mubr.f32.mxu1 %v1294_v0  ;;  %p1234_p2 = por %p1233_p10, %p1232_p7 }
  0x44   : > { %996 = vmatmul.mubr.msk.f32.gmra.mrb[4].mxu0 %vm227_vm1, %v220_v7  ;;  %p1235_p4 = pnand %p1234_p2, %p1228_p13 }
  0x45   : > { %1003 = vmatmul.mubr.msk.f32.gmra.mrb[4].mxu1 %vm227_vm1, %v220_v7  ;;  %334 = vmatprep.mubr.f32.mxu0 %v1294_v0 }
  0x46   : > { %429 = vmatprep.mubr.f32.mxu1 %v1294_v0 }
  0x48   : > { %997 = vmatmul.mubr.msk.f32.gmra.mrb[6].mxu0 %vm227_vm1, %v221_v8 }
  0x49   : > { %1004 = vmatmul.mubr.msk.f32.gmra.mrb[6].mxu1 %vm227_vm1, %v221_v8  ;;  %340 = vmatprep.mubr.f32.mxu0 %v1294_v0 }
  0x4a   : > { %435 = vmatprep.mubr.f32.mxu1 %v1294_v0 }
  0x4c   : > { %998 = vmatmul.mubr.msk.f32.gmra.mrb[8].mxu0 %vm227_vm1, %v222_v9 }
  0x4d   : > { %1005 = vmatmul.mubr.msk.f32.gmra.mrb[8].mxu1 %vm227_vm1, %v222_v9  ;;  %560 = vmatprep.mubr.f32.mxu0 %v1294_v0 }
  0x4e   : > { %655 = vmatprep.mubr.f32.mxu1 %v1294_v0 }
 0x10f   : > { %v318_v10 = vpop.f32.mrb[0].mxu0 }
 0x110   : > { %v413_v11 = vpop.f32.mrb[0].mxu1  ;;  %1115 = vtanh.f32 %v318_v10  ;;  %v320_v12 = vpop.f32.mrb[1].mxu0 }
 0x111   : > { %v415_v13 = vpop.f32.mrb[1].mxu1  ;;  %1117 = vtanh.f32 %v413_v11 }
 0x112   : > { %1119 = vtanh.f32 %v320_v12 }
 0x113   : > { %1121 = vtanh.f32 %v415_v13  ;;  %v324_v14 = vpop.f32.mrb[2].mxu0 }
 0x114   : > { %v419_v15 = vpop.f32.mrb[2].mxu1  ;;  %1123 = vtanh.f32 %v324_v14  ;;  %v326_v16 = vpop.f32.mrb[3].mxu0 }
 0x115   : > { %v421_v17 = vpop.f32.mrb[3].mxu1  ;;  %1125 = vtanh.f32 %v419_v15 }
 0x116   : > { %1127 = vtanh.f32 %v326_v16 }
 0x117   : > { %1129 = vtanh.f32 %v421_v17  ;;  %v330_v18 = vpop.f32.mrb[4].mxu0 }
 0x118   : > { %v425_v19 = vpop.f32.mrb[4].mxu1  ;;  %1131 = vtanh.f32 %v330_v18  ;;  %v332_v20 = vpop.f32.mrb[5].mxu0 }
 0x119   : > { %v427_v21 = vpop.f32.mrb[5].mxu1  ;;  %1133 = vtanh.f32 %v425_v19 }
 0x11a   : > { %v1116_v22 = vpop.eup %1115  ;;  %1135 = vtanh.f32 %v332_v20 }
 0x11b   : > { %v1118_v23 = vpop.eup %1117  ;;  %1137 = vtanh.f32 %v427_v21  ;;  %v336_v24 = vpop.f32.mrb[6].mxu0 }
 0x11c   : > { %v431_v25 = vpop.f32.mrb[6].mxu1  ;;  %v1120_v26 = vpop.eup %1119  ;;  %1139 = vtanh.f32 %v336_v24 }
 0x11d   : > { %v338_v27 = vpop.f32.mrb[7].mxu0  ;;  %v433_v28 = vpop.f32.mrb[7].mxu1  ;;  %1141 = vtanh.f32 %v431_v25 }
 0x11e   : > { %v1122_v29 = vpop.eup %1121  ;;  %1143 = vtanh.f32 %v338_v27 }
 0x11f   : > { %v1124_v30 = vpop.eup %1123  ;;  %1145 = vtanh.f32 %v433_v28  ;;  %v342_v32 = vpop.f32.mrb[8].mxu0 }
 0x120   : > { %v1126_v31 = vpop.eup %1125  ;;  %v437_v33 = vpop.f32.mrb[8].mxu1  ;;  %v1035_v34 = vpack.c.bf16 %v1124_v30, %v1116_v22 }
 0x121   : > { %v1128_v35 = vpop.eup %1127  ;;  %v344_v36 = vpop.f32.mrb[9].mxu0  ;;  %v1043_v38 = vpack.c.bf16 %v1126_v31, %v1118_v23 }
 0x122   : > { %v439_v37 = vpop.f32.mrb[9].mxu1  ;;  %v1130_v39 = vpop.eup %1129  ;;  %v1033_v40 = vpack.c.bf16 %v1128_v35, %v1120_v26  ;;  %1147 = vtanh.f32 %v344_v36 }
 0x123   : > { %v1132_v41 = vpop.eup %1131  ;;  %v1041_v42 = vpack.c.bf16 %v1130_v39, %v1122_v29  ;;  %1149 = vtanh.f32 %v439_v37 }
 0x124   : > { %v1134_v43 = vpop.eup %1133  ;;  %1034 = vmatprep.subr.bf16.mxu0 %v1033_v40  ;;  %1151 = vtanh.f32 %v342_v32 }
 0x125   : > { %v1136_v44 = vpop.eup %1135  ;;  %1042 = vmatprep.subr.bf16.mxu1 %v1041_v42  ;;  %1036 = vmatpush1.bf16.msra.mxu0 %v1035_v34  ;;  %1153 = vtanh.f32 %v437_v33 }
 0x126   : > { %v1138_v45 = vpop.eup %1137  ;;  %1044 = vmatpush1.bf16.msra.mxu1 %v1043_v38 }
 0x127   : > { %v1140_v46 = vpop.eup %1139 }
 0x128   : > { %v1142_v47 = vpop.eup %1141  ;;  %v1039_v48 = vpack.c.bf16 %v1140_v46, %v1132_v41 }
 0x129   : > { %v1144_v49 = vpop.eup %1143  ;;  %v1047_v50 = vpack.c.bf16 %v1142_v47, %v1134_v43 }
 0x12a   : > { %v1146_v51 = vpop.eup %1145  ;;  %v1037_v52 = vpack.c.bf16 %v1144_v49, %v1136_v44 }
 0x12b   : > { %v1045_v53 = vpack.c.bf16 %v1146_v51, %v1138_v45  ;;  %v706_v45 = vld [vmem:[%s1572_s3] sm:$0x1] }
 0x12c   : > { %1038 = vmatprep.subr.bf16.mxu0 %v1037_v52  ;;  %v1148_v54 = vpop.eup %1147 }
 0x12d   : > { %1046 = vmatprep.subr.bf16.mxu1 %v1045_v53  ;;  %1040 = vmatpush1.bf16.msra.mxu0 %v1039_v48  ;;  %v1150_v55 = vpop.eup %1149  ;;  %v1295_v48 = vmov 1966171168  }
 0x12e   : > { %1048 = vmatpush1.bf16.msra.mxu1 %v1047_v50  ;;  %1006 = vmatprep.subr.msk.mxu0 %vm483_vm2, %v1148_v54  ;;  %v1152_v57 = vpop.eup %1151  ;;  %v871_v49 = vunpack.c.l.s4 %v1295_v48  ;;  %v873_v50 = vlaneseq }
 0x12f   : > { %1013 = vmatprep.subr.msk.mxu1 %vm483_vm2, %v1150_v55  ;;  %v1154_v58 = vpop.eup %1153 }
 0x130   : > { %v872_v51 = vunpack.c.0.s8 %v871_v49  ;;  %v874_v52 = vshrl.u32 %v873_v50, 7  ;;  %vm895_vm4 = vcmp.lt.s32.totalorder %v873_v50, 512 }
 0x131   : > { %1007 = vmatpush1.msk.msra.mxu0 %vm483_vm2, %v1152_v57 }
 0x132   : > { %1014 = vmatpush1.msk.msra.mxu1 %vm483_vm2, %v1154_v58  ;;  %1008 = vmatmul.mubr.msk.f32.vlgmr.msra.gmra.mrb[10].mxu0 %vm467_vm3, %v462_v56  ;;  %v875_v54 = vsub.s32 %v872_v51, %v874_v52 }
 0x133   : > { %1015 = vmatmul.mubr.msk.f32.vlgmr.msra.gmra.mrb[10].mxu1 %vm467_vm3, %v462_v56  ;;  %566 = vmatprep.mubr.f32.mxu0 %v1294_v0 }
 0x134   : > { %661 = vmatprep.mubr.f32.mxu1 %v1294_v0 }
 0x136   : > { %1009 = vmatmul.mubr.msk.f32.gmra.mrb[12].mxu0 %vm467_vm3, %v463_v59 }
 0x137   : > { %1016 = vmatmul.mubr.msk.f32.gmra.mrb[12].mxu1 %vm467_vm3, %v463_v59  ;;  %572 = vmatprep.mubr.f32.mxu0 %v1294_v0 }
 0x138   : > { %667 = vmatprep.mubr.f32.mxu1 %v1294_v0 }
 0x13a   : > { %1010 = vmatmul.mubr.msk.f32.gmra.mrb[14].mxu0 %vm467_vm3, %v464_v60 }
 0x13b   : > { %1017 = vmatmul.mubr.msk.f32.gmra.mrb[14].mxu1 %vm467_vm3, %v464_v60  ;;  %578 = vmatprep.mubr.f32.mxu0 %v1294_v0 }
 0x13c   : > { %673 = vmatprep.mubr.f32.mxu1 %v1294_v0 }
 0x13e   : > { %1011 = vmatmul.mubr.msk.f32.gmra.mrb[16].mxu0 %vm467_vm3, %v465_v61 }
 0x13f   : > { %1018 = vmatmul.mubr.msk.f32.gmra.mrb[16].mxu1 %vm467_vm3, %v465_v61  ;;  %584 = vmatprep.mubr.f32.mxu0 %v1294_v0 }
 0x140   : > { %679 = vmatprep.mubr.f32.mxu1 %v1294_v0 }
 0x142   : > { %1012 = vmatmul.mubr.msk.f32.gmra.mrb[18].mxu0 %vm467_vm3, %v466_v62 }
 0x143   : > { %1019 = vmatmul.mubr.msk.f32.gmra.mrb[18].mxu1 %vm467_vm3, %v466_v62  ;;  %786 = vmatprep.mubr.f32.mxu0 %v1294_v0 }
 0x144   : > { %857 = vmatprep.mubr.f32.mxu1 %v1294_v0 }
 0x205   : > { %v562_v63 = vpop.f32.mrb[10].mxu0 }
 0x206   : > { %1155 = vtanh.f32 %v562_v63  ;;  %v657_v1 = vpop.f32.mrb[10].mxu1  ;;  %v564_v2 = vpop.f32.mrb[11].mxu0 }
 0x207   : > { %1157 = vtanh.f32 %v657_v1  ;;  %v659_v3 = vpop.f32.mrb[11].mxu1 }
 0x208   : > { %1159 = vtanh.f32 %v564_v2 }
 0x209   : > { %1161 = vtanh.f32 %v659_v3  ;;  %v568_v4 = vpop.f32.mrb[12].mxu0 }
 0x20a   : > { %1163 = vtanh.f32 %v568_v4  ;;  %v663_v5 = vpop.f32.mrb[12].mxu1  ;;  %v570_v6 = vpop.f32.mrb[13].mxu0 }
 0x20b   : > { %1165 = vtanh.f32 %v663_v5  ;;  %v665_v7 = vpop.f32.mrb[13].mxu1 }
 0x20c   : > { %1167 = vtanh.f32 %v570_v6 }
 0x20d   : > { %1169 = vtanh.f32 %v665_v7  ;;  %v574_v8 = vpop.f32.mrb[14].mxu0 }
 0x20e   : > { %1171 = vtanh.f32 %v574_v8  ;;  %v669_v9 = vpop.f32.mrb[14].mxu1  ;;  %v576_v0 = vpop.f32.mrb[15].mxu0 }
 0x20f   : > { %1173 = vtanh.f32 %v669_v9  ;;  %v671_v10 = vpop.f32.mrb[15].mxu1 }
 0x210   : > { %v1156_v11 = vpop.eup %1155  ;;  %1175 = vtanh.f32 %v576_v0 }
 0x211   : > { %v1158_v12 = vpop.eup %1157  ;;  %1177 = vtanh.f32 %v671_v10  ;;  %v580_v13 = vpop.f32.mrb[16].mxu0 }
 0x212   : > { %v1160_v14 = vpop.eup %1159  ;;  %1179 = vtanh.f32 %v580_v13  ;;  %v675_v15 = vpop.f32.mrb[16].mxu1 }
 0x213   : > { %v582_v16 = vpop.f32.mrb[17].mxu0  ;;  %v1162_v17 = vpop.eup %1161  ;;  %1181 = vtanh.f32 %v675_v15 }
 0x214   : > { %v677_v18 = vpop.f32.mrb[17].mxu1  ;;  %v1164_v19 = vpop.eup %1163  ;;  %1183 = vtanh.f32 %v582_v16 }
 0x215   : > { %v1166_v20 = vpop.eup %1165  ;;  %1185 = vtanh.f32 %v677_v18  ;;  %v586_v21 = vpop.f32.mrb[18].mxu0  ;;  %v1051_v22 = vpack.c.bf16 %v1164_v19, %v1156_v11 }
 0x216   : > { %v1168_v23 = vpop.eup %1167  ;;  %v681_v24 = vpop.f32.mrb[18].mxu1  ;;  %v1059_v26 = vpack.c.bf16 %v1166_v20, %v1158_v12 }
 0x217   : > { %v588_v25 = vpop.f32.mrb[19].mxu0  ;;  %v1170_v27 = vpop.eup %1169  ;;  %v1049_v28 = vpack.c.bf16 %v1168_v23, %v1160_v14 }
 0x218   : > { %v683_v29 = vpop.f32.mrb[19].mxu1  ;;  %v1172_v30 = vpop.eup %1171  ;;  %v1057_v31 = vpack.c.bf16 %v1170_v27, %v1162_v17  ;;  %1187 = vtanh.f32 %v588_v25 }
 0x219   : > { %v1174_v32 = vpop.eup %1173  ;;  %1050 = vmatprep.subr.bf16.mxu0 %v1049_v28  ;;  %1189 = vtanh.f32 %v683_v29 }
 0x21a   : > { %v1176_v33 = vpop.eup %1175  ;;  %1058 = vmatprep.subr.bf16.mxu1 %v1057_v31  ;;  %1052 = vmatpush1.bf16.msra.mxu0 %v1051_v22  ;;  %1191 = vtanh.f32 %v586_v21 }
 0x21b   : > { %v1178_v34 = vpop.eup %1177  ;;  %1060 = vmatpush1.bf16.msra.mxu1 %v1059_v26  ;;  %1193 = vtanh.f32 %v681_v24 }
 0x21c   : > { %v1180_v35 = vpop.eup %1179 }
 0x21d   : > { %v1182_v36 = vpop.eup %1181  ;;  %v1055_v37 = vpack.c.bf16 %v1180_v35, %v1172_v30 }
 0x21e   : > { %v1184_v38 = vpop.eup %1183  ;;  %v1063_v39 = vpack.c.bf16 %v1182_v36, %v1174_v32 }
 0x21f   : > { %v1186_v40 = vpop.eup %1185  ;;  %v1053_v41 = vpack.c.bf16 %v1184_v38, %v1176_v33 }
 0x220   : > { %v1061_v42 = vpack.c.bf16 %v1186_v40, %v1178_v34 }
 0x221   : > { %1054 = vmatprep.subr.bf16.mxu0 %v1053_v41 }
 0x222   : > { %v1188_v43 = vpop.eup %1187  ;;  %1062 = vmatprep.subr.bf16.mxu1 %v1061_v42  ;;  %1056 = vmatpush1.bf16.msra.mxu0 %v1055_v37 }
 0x223   : > { %v1190_v44 = vpop.eup %1189  ;;  %1064 = vmatpush1.bf16.msra.mxu1 %v1063_v39  ;;  %1020 = vmatprep.subr.msk.mxu0 %vm483_vm2, %v1188_v43 }
 0x224   : > { %1023 = vmatprep.subr.msk.mxu1 %vm483_vm2, %v1190_v44  ;;  %v1192_v46 = vpop.eup %1191 }
 0x225   : > { %v1194_v47 = vpop.eup %1193 }
 0x226   : > { %1021 = vmatpush1.msk.msra.mxu0 %vm483_vm2, %v1192_v46 }
 0x227   : > { %1024 = vmatpush1.msk.msra.mxu1 %vm483_vm2, %v1194_v47  ;;  %1022 = vmatmul.mubr.msk.f32.vlgmr.msra.gmra.mrb[20].mxu0 %vm467_vm3, %v706_v45 }
 0x228   : > { %1025 = vmatmul.mubr.msk.f32.vlgmr.msra.gmra.mrb[20].mxu1 %vm467_vm3, %v706_v45 }
 0x2fa   : > { %v788_v53 = vpop.f32.mrb[20].mxu0 }
 0x2fb   : > { %v859_v55 = vpop.f32.mrb[20].mxu1  ;;  %v790_v56 = vpop.f32.mrb[21].mxu0 }
 0x2fc   : > { %v868_v57 = vcombine.low %v788_v53, %v790_v56  ;;  %v861_v58 = vpop.f32.mrb[21].mxu1 }
 0x2fd   : > { %v869_v59 = vcombine.low %v859_v55, %v861_v58 }
 0x2fe   : > { %v876_v60 = vrot.slane %v868_v57, %v875_v54 }
 0x2ff   : > { %v883_v61 = vrot.slane %v869_v59, %v875_v54 }
 0x301   : > { %v884_v62 = vcombine.low %v876_v60, %v883_v61 }
 0x303   : > { %v891_v63 = vrot.slane %v884_v62, %v875_v54 }
 0x305   : > { %897 = vst.msk [vmem:[%s213_s25] sm:$0xf] %vm895_vm4, %v891_v63 }
 0x306   : > { %1238 = shalt.err (!%p1235_p4)
}
 0x307   : > { %s1239_s7 = scalar_lea.hbm %s1525_s6, 64  ;;  %s1243_s11 = scalar_lea.hbm %s1573_s4, 128 }
 0x308   : > { %p1240_p5 = scmp.ne.s32.totalorder %s1525_s6, %s1239_s7  ;;  %p1244_p0 = scmp.lt.u32.totalorder %s1525_s6, %s1573_s4 }
 0x309   : > { %p1245_p1 = scmp.lt.u32.totalorder %s1243_s11, %s1239_s7  ;;  %p1247_p6 = scmp.lt.u32.totalorder %s1239_s7, %s1525_s6 }
 0x30a   : > { %p1241_p8 = pnand %p1240_p5, %p1582_p11 }
 0x30b   : > { %p1246_p3 = por %p1245_p1, %p1244_p0 }
 0x30c   : > { %p1242_p9 = pneg %p1241_p8 }
 0x30d   : > { %p1248_p12 = por %p1247_p6, %p1246_p3 }
 0x30f   : > { %p1249_p13 = pnand %p1248_p12, %p1242_p9 }
 0x311   : > { %1252 = shalt.err (!%p1249_p13)
}
 0x312   : > { %1067 = dma.vmem_to_hbm [thread:$0]  (%p1582_p11), %s1527_s29, 64, %s1525_s6, %s899_s9  }
 0x313 PF: > { %s925_s22 = sand.u32 1, %s1279_s15   ;;  %p1583_p7 = scmp.ne.s32.totalorder %s1578_s28, 0 }
 0x314   : > { %p1584_p10 = scmp.ge.s32.totalorder %s1291_s18, 2  ;;  %s926_s23 = scalar_lea.sflag [#allocation4], %s925_s22 }
 0x316   : > { %p1074_p2 = pnand %p1584_p10, %p1583_p7 }
 0x318   : > { %1274 = dma.done.wait (!%p1074_p2), %s926_s23, 64  }
 0x319   : > { %1276 = vsyncadd (!%p1074_p2), %s926_s23, 4294967232  ;;  %p17_p4 = scmp.ge.s32.totalorder %s1347_s21, 4   ;;  %s1585_s15 = smov %s1283_s16 }
 0x31a   : > { %s1586_s16 = smov %s1287_s17  ;;  %s1587_s17 = smov %s1359_s24 }
 0x31b   : > { %s1588_s18 = smov %s1347_s21  ;;  %19 = sbr.rel (!%p17_p4) target bundleno = 5 (0x5), region = 81 }
 0x322   :  { %931 = vsyncpa [#allocation3], 1 }
 0x323   :  { %933 = vsyncpa [#allocation3 + $0x1], 1 }
 0x324   :  { %934 = vsyncpa [#allocation4], 1 }
 0x325   :  { %936 = vsyncpa [#allocation4 + $0x1], 1 }

</bundles_post_ra>
